<compile_context>
chip_gen: v5e
topology: v5e:2x2
jax: 0.10.0
libtpu: 0.0.40
codegen_flags: <defaults>
</compile_context>

<pallas_src>
import functools

import jax
import jax.numpy as jnp
from jax.experimental import pallas as pl
from jax.experimental.pallas import tpu as pltpu

LOG_SIG_MAX = 2.0
LOG_SIG_MIN = -20.0


def _ru(x, m):
    return ((x + m - 1) // m) * m


# ----------------------------- kernel ---------------------------------------


def gaussian_policy_kernel(state_ref, p_ref, out_ref, *,
                           obs, A, C, C_out, r_w1, r_w2, r_wh, r_b):
    x = state_ref[...]                                   # (TB, obs)

    # linear1 + relu -- computed at padded lane width C (extra cols are zero).
    w1 = p_ref[r_w1:r_w1 + obs, :C]                      # (obs, C)
    b1 = p_ref[r_b:r_b + 1, :C]                          # (1, C)
    h = jnp.maximum(jnp.dot(x, w1, preferred_element_type=jnp.float32) + b1, 0.0)
    h = h.astype(p_ref.dtype)                            # keep MXU on fast path (no-op for f32)

    # linear2 + relu -- K = C rows of w2; rows >= h0 are zero in the slab.
    w2 = p_ref[r_w2:r_w2 + C, :C]                        # (C, C)
    b2 = p_ref[r_b + 1:r_b + 2, :C]                      # (1, C)
    h = jnp.maximum(jnp.dot(h, w2, preferred_element_type=jnp.float32) + b2, 0.0)
    h = h.astype(p_ref.dtype)

    # fused heads: one (C, C_out) matmul -> [mean | log_std | zero padding].
    wh = p_ref[r_wh:r_wh + C, :C_out]                    # (C, C_out)
    bh = p_ref[r_b + 2:r_b + 3, :C_out]                  # (1, C_out)
    y = jnp.dot(h, wh, preferred_element_type=jnp.float32) + bh

    # clamp only the log_std columns [A, 2A); mean and padding pass through.
    col = jax.lax.broadcasted_iota(jnp.int32, y.shape, 1)
    y = jnp.where((col >= A) & (col < 2 * A),
                  jnp.clip(y, LOG_SIG_MIN, LOG_SIG_MAX), y)

    out_ref[...] = y.astype(out_ref.dtype)               # unmasked, lane-dense store


# ----------------------------- parameter packing ----------------------------


def pack_params(params, dtype=jnp.float32):
    """Packs (w1,b1,w2,b2,wm,bm,ws,bs) into one zero-padded slab + metadata.

    Done once, outside the hot path.  Row starts are multiples of 8 (sublane),
    slab width is a multiple of 128 (lane-dense).  The w2 / head row blocks are
    padded to C rows so the kernel can run every layer at the padded lane width
    (the padding rows/cols are zeros, so the math is unchanged and exact).
    """
    w1, b1, w2, b2, wm, bm, ws, bs = params
    obs, h0 = w1.shape
    _, h1 = w2.shape
    A = wm.shape[1]

    C = _ru(max(h0, h1), 128)          # padded hidden width
    C_out = _ru(2 * A, 128)            # padded head-output width
    W = max(C, C_out)                  # slab lane width

    r_w1 = 0
    r_w2 = r_w1 + _ru(obs, 8)
    r_wh = r_w2 + C                    # w2 block padded to C rows (matches widened h)
    r_b = r_wh + C                     # head block padded to C rows
    rows = _ru(r_b + 3, 8)

    slab = jnp.zeros((rows, W), jnp.float32)
    slab = slab.at[r_w1:r_w1 + obs, :h0].set(w1)
    slab = slab.at[r_w2:r_w2 + h0, :h1].set(w2)
    slab = slab.at[r_wh:r_wh + h1, :A].set(wm)
    slab = slab.at[r_wh:r_wh + h1, A:2 * A].set(ws)
    slab = slab.at[r_b, :h0].set(b1[0])
    slab = slab.at[r_b + 1, :h1].set(b2[0])
    slab = slab.at[r_b + 2, :A].set(bm[0])
    slab = slab.at[r_b + 2, A:2 * A].set(bs[0])
    slab = slab.astype(dtype)

    meta = dict(obs=obs, h0=h0, h1=h1, A=A, C=C, C_out=C_out,
                r_w1=r_w1, r_w2=r_w2, r_wh=r_wh, r_b=r_b)
    return slab, meta


# ----------------------------- wrapper ---------------------------------------


def _pick_tb(B, itemsize):
    sub = 8 if itemsize == 4 else 16            # bf16 tiles are (16, 128)
    if B <= 256:
        return _ru(B, sub)                      # one tile for small batches
    # >= 2 grid steps so both v7x TensorCores get work; <= 2048 keeps
    # double-buffered blocks + intermediates far below the VMEM limit.
    return min(2048, _ru(pl.cdiv(B, 2), 16))


def gaussian_policy_forward(state, packed):
    """Fused MLP forward.  Returns (mean, log_std) as float32."""
    slab, meta = packed
    obs, A = meta["obs"], meta["A"]
    C, C_out = meta["C"], meta["C_out"]
    B = state.shape[0]

    TB = _pick_tb(B, state.dtype.itemsize)
    grid = (pl.cdiv(B, TB),)                    # partial last block handled by Pallas

    kernel = functools.partial(
        gaussian_policy_kernel,
        obs=obs, A=A, C=C, C_out=C_out,
        r_w1=meta["r_w1"], r_w2=meta["r_w2"], r_wh=meta["r_wh"], r_b=meta["r_b"])

    out = pl.pallas_call(
        kernel,
        out_shape=jax.ShapeDtypeStruct((B, C_out), jnp.float32),
        grid=grid,
        in_specs=[
            pl.BlockSpec((TB, obs), lambda i: (i, 0)),       # batch-tiled state
            pl.BlockSpec(slab.shape, lambda i: (0, 0)),      # VMEM-resident params
        ],
        out_specs=pl.BlockSpec((TB, C_out), lambda i: (i, 0)),  # lane-dense output
        compiler_params=pltpu.CompilerParams(
            dimension_semantics=("parallel",),
            vmem_limit_bytes=32 * 1024 * 1024),
    )(state, slab)

    mean = out[:, :A]
    log_std = out[:, A:2 * A]
    return mean, log_std


# ----------------------------- init (matches torch) --------------------------


def xavier_uniform(key, fan_in, fan_out):
    # matches torch.nn.init.xavier_uniform_ with gain=1 (weights stored (in, out))
    limit = jnp.sqrt(6.0 / (fan_in + fan_out))
    return jax.random.uniform(key, (fan_in, fan_out), jnp.float32, -limit, limit)


def init_params(key, obs_dim, action_dim, hidden_dim=(32, 32)):
    k1, k2, k3, k4 = jax.random.split(key, 4)
    h0, h1 = hidden_dim
    w1 = xavier_uniform(k1, obs_dim, h0)
    b1 = jnp.zeros((1, h0), jnp.float32)
    w2 = xavier_uniform(k2, h0, h1)
    b2 = jnp.zeros((1, h1), jnp.float32)
    wm = xavier_uniform(k3, h1, action_dim)
    bm = jnp.zeros((1, action_dim), jnp.float32)
    ws = xavier_uniform(k4, h1, action_dim)
    bs = jnp.zeros((1, action_dim), jnp.float32)
    return (w1, b1, w2, b2, wm, bm, ws, bs)


# TODO(synk): GaussianPolicy.sample() (Normal.rsample + tanh squash + log-prob)
# is a stochastic wrapper around forward(); only forward() is implemented here.
# TODO(synk): action_scale / action_bias are unused by forward() and therefore
# not part of the kernel.

if __name__ == "__main__":
    key = jax.random.PRNGKey(0)
    obs_dim, action_dim, hidden = 16, 8, (32, 32)
    batch = 8

    pkey, skey = jax.random.split(key)
    params = init_params(pkey, obs_dim, action_dim, hidden)
    state = jax.random.normal(skey, (batch, obs_dim), jnp.float32)

    # reference in plain JAX (same math as the torch forward)
    w1, b1, w2, b2, wm, bm, ws, bs = params
    h1_ = jnp.maximum(state @ w1 + b1, 0.0)
    h2_ = jnp.maximum(h1_ @ w2 + b2, 0.0)
    mean_ref = h2_ @ wm + bm
    log_std_ref = jnp.clip(h2_ @ ws + bs, LOG_SIG_MIN, LOG_SIG_MAX)

    # f32 slab/state path: strict check.
    packed_f32 = pack_params(params, jnp.float32)
    mean, log_std = gaussian_policy_forward(state, packed_f32)
    jax.block_until_ready((mean, log_std))
    assert jnp.allclose(mean, mean_ref, atol=1e-5)
    assert jnp.allclose(log_std, log_std_ref, atol=1e-5)

    # bf16 slab/state path (halves HBM traffic; f32 MXU accumulation kept).
    packed_bf16 = pack_params(params, jnp.bfloat16)
    mean_b, log_std_b = gaussian_policy_forward(state.astype(jnp.bfloat16),
                                                packed_bf16)
    jax.block_until_ready((mean_b, log_std_b))
    assert jnp.allclose(mean_b, mean_ref, atol=5e-2, rtol=5e-2)
    assert jnp.allclose(log_std_b, log_std_ref, atol=5e-2, rtol=5e-2)

    print("KERNEL_OK")
</pallas_src>

<mosaic_0001>
module attributes {stable_mosaic.version = 11 : i64} {
  func.func @gaussian_policy_kernel(%arg0: i32, %arg1: memref<8x16xf32, #tpu.memory_space<vmem>>, %arg2: memref<280x128xf32, #tpu.memory_space<vmem>>, %arg3: memref<8x128xf32, #tpu.memory_space<vmem>>) attributes {dimension_semantics = [#tpu.dimension_semantics<parallel>], iteration_bounds = array<i64: 1>, scalar_prefetch = 0 : i64, scratch_operands = 0 : i64, tpu.core_type = #tpu.core_type<tc>, window_params = [{transform_indices = @transform_0, window_bounds = array<i64: 8, 16>}, {pipeline_mode = #tpu.pipeline_mode<synchronous>, transform_indices = @transform_1, window_bounds = array<i64: 280, 128>}, {transform_indices = @transform_2, window_bounds = array<i64: 8, 128>}]} {
    %c0 = arith.constant 0 : index
    %c0_0 = arith.constant 0 : index
    %0 = vector.load %arg1[%c0, %c0_0] : memref<8x16xf32, #tpu.memory_space<vmem>>, vector<8x16xf32>
    %c0_1 = arith.constant 0 : index
    %c0_2 = arith.constant 0 : index
    %1 = vector.load %arg2[%c0_1, %c0_2] : memref<280x128xf32, #tpu.memory_space<vmem>>, vector<16x128xf32>
    %c272 = arith.constant 272 : index
    %c0_3 = arith.constant 0 : index
    %2 = vector.load %arg2[%c272, %c0_3] : memref<280x128xf32, #tpu.memory_space<vmem>>, vector<1x128xf32>
    %cst = arith.constant dense<0.000000e+00> : vector<8x128xf32>
    %3 = tpu.matmul %0, %1, %cst {dimension_numbers = #tpu.dot_dimension_numbers<[1], [0], [0], [1], [0, 0, 1, 1], [], []>} : vector<8x16xf32>, vector<16x128xf32>, vector<8x128xf32> -> vector<8x128xf32>
    %4 = vector.broadcast %2 : vector<1x128xf32> to vector<8x128xf32>
    %5 = arith.addf %3, %4 : vector<8x128xf32>
    %cst_4 = arith.constant 0.000000e+00 : f32
    %6 = vector.broadcast %cst_4 : f32 to vector<8x128xf32>
    %7 = arith.maximumf %5, %6 : vector<8x128xf32>
    %c16 = arith.constant 16 : index
    %c0_5 = arith.constant 0 : index
    %8 = vector.load %arg2[%c16, %c0_5] : memref<280x128xf32, #tpu.memory_space<vmem>>, vector<128x128xf32>
    %c273 = arith.constant 273 : index
    %c0_6 = arith.constant 0 : index
    %9 = vector.load %arg2[%c273, %c0_6] : memref<280x128xf32, #tpu.memory_space<vmem>>, vector<1x128xf32>
    %cst_7 = arith.constant dense<0.000000e+00> : vector<8x128xf32>
    %10 = tpu.matmul %7, %8, %cst_7 {dimension_numbers = #tpu.dot_dimension_numbers<[1], [0], [0], [1], [0, 0, 1, 1], [], []>} : vector<8x128xf32>, vector<128x128xf32>, vector<8x128xf32> -> vector<8x128xf32>
    %11 = vector.broadcast %9 : vector<1x128xf32> to vector<8x128xf32>
    %12 = arith.addf %10, %11 : vector<8x128xf32>
    %cst_8 = arith.constant 0.000000e+00 : f32
    %13 = vector.broadcast %cst_8 : f32 to vector<8x128xf32>
    %14 = arith.maximumf %12, %13 : vector<8x128xf32>
    %c144 = arith.constant 144 : index
    %c0_9 = arith.constant 0 : index
    %15 = vector.load %arg2[%c144, %c0_9] : memref<280x128xf32, #tpu.memory_space<vmem>>, vector<128x128xf32>
    %c274 = arith.constant 274 : index
    %c0_10 = arith.constant 0 : index
    %16 = vector.load %arg2[%c274, %c0_10] : memref<280x128xf32, #tpu.memory_space<vmem>>, vector<1x128xf32>
    %cst_11 = arith.constant dense<0.000000e+00> : vector<8x128xf32>
    %17 = tpu.matmul %14, %15, %cst_11 {dimension_numbers = #tpu.dot_dimension_numbers<[1], [0], [0], [1], [0, 0, 1, 1], [], []>} : vector<8x128xf32>, vector<128x128xf32>, vector<8x128xf32> -> vector<8x128xf32>
    %18 = vector.broadcast %16 : vector<1x128xf32> to vector<8x128xf32>
    %19 = arith.addf %17, %18 : vector<8x128xf32>
    %20 = tpu.iota {dimensions = array<i32: 1>} : vector<8x128xi32>
    %c8_i32 = arith.constant 8 : i32
    %21 = vector.broadcast %c8_i32 : i32 to vector<8x128xi32>
    %22 = arith.cmpi sge, %20, %21 : vector<8x128xi32>
    %c16_i32 = arith.constant 16 : i32
    %23 = vector.broadcast %c16_i32 : i32 to vector<8x128xi32>
    %24 = arith.cmpi slt, %20, %23 : vector<8x128xi32>
    %25 = arith.andi %22, %24 : vector<8x128xi1>
    %cst_12 = arith.constant -2.000000e+01 : f32
    %cst_13 = arith.constant 2.000000e+00 : f32
    %26 = vector.broadcast %cst_12 : f32 to vector<8x128xf32>
    %27 = arith.maximumf %26, %19 : vector<8x128xf32>
    %28 = vector.broadcast %cst_13 : f32 to vector<8x128xf32>
    %29 = arith.minimumf %28, %27 : vector<8x128xf32>
    %30 = arith.select %25, %29, %19 : vector<8x128xi1>, vector<8x128xf32>
    %c0_14 = arith.constant 0 : index
    %c0_15 = arith.constant 0 : index
    %31 = vector.load %arg3[%c0_14, %c0_15] : memref<8x128xf32, #tpu.memory_space<vmem>>, vector<8x128xf32>
    tpu.vector_store %arg3[%c0_14, %c0_15], %30 {strides = array<i32>} : memref<8x128xf32, #tpu.memory_space<vmem>>, vector<8x128xf32>,
    return
  }
  func.func @transform_0(%arg0: i32) -> (i32, i32) {
    %c0_i32 = arith.constant 0 : i32
    %c0_i32_0 = arith.constant 0 : i32
    return %arg0, %c0_i32 : i32, i32
  }
  func.func @transform_1(%arg0: i32) -> (i32, i32) {
    %c0_i32 = arith.constant 0 : i32
    %c0_i32_0 = arith.constant 0 : i32
    %c0_i32_1 = arith.constant 0 : i32
    return %c0_i32, %c0_i32_0 : i32, i32
  }
  func.func @transform_2(%arg0: i32) -> (i32, i32) {
    %c0_i32 = arith.constant 0 : i32
    %c0_i32_0 = arith.constant 0 : i32
    return %arg0, %c0_i32 : i32, i32
  }
}

</mosaic_0001>

<bundles_post_ra>
// kernel: tpu_custom_call.1
= control target key start
LH: loop header
LB: loop body
LE: loop exit
PB: predicated region body
PF: predicated region fallthrough
CT: control target
= control target key end

     0   :  { %7 = vsyncpa [#allocation3], 0  ;;  %s292_s0 = inlined_call_operand.hbm [shape: f32[8,16], index: 0, kind: input, shape index: {}]   ;;  %s293_s1 = inlined_call_operand.hbm [shape: f32[280,128], index: 1, kind: input, shape index: {}]   ;;  %s294_s2 = inlined_call_operand.hbm [shape: f32[8,128], index: 2, kind: output, shape index: {}]  }
   0x1   :  { %8 = vsyncpa [#allocation6], 0 }
   0x2   :  { %9 = vsyncpa [#allocation4], 0  ;;  %s15_s11 = sshll.u32 %s292_s0, 4  ;;  %s263_s12 = smov [#allocation2]   ;;  %s16_s11 = int_to_ptr.hbm [resolvable:$true] %s15_s11 }
   0x3   :  { %s17_s13 = sshll.u32 %s263_s12, 4  ;;  %s25_s16 = sshll.u32 %s293_s1, 4  ;;  %s18_s13 = int_to_ptr.vmem [resolvable:$true] %s17_s13  ;;  %s26_s16 = int_to_ptr.hbm [resolvable:$true] %s25_s16 }
   0x4   :  { %20 = dma.hbm_to_vmem [thread:$0]  %s16_s11, 128, %s18_s13, [#allocation3]  }
   0x5   :  { %s264_s17 = smov [#allocation5]   ;;  %s265_s19 = smov 128  }
   0x6   :  { %s27_s18 = sshll.u32 %s264_s17, 4  ;;  %s266_s20 = smov 8   ;;  %s28_s18 = int_to_ptr.vmem [resolvable:$true] %s27_s18 }
   0x7   :  { %33 = dma.hbm_to_vmem [thread:$0]  %s26_s16, 4480, %s28_s18, [#allocation6], %s265_s19, %s265_s19, %s266_s20  }
   0x8   :  { %257 = dma.done.wait [#allocation3], 128  }
   0x9   :  { %258 = vsyncadd [#allocation3], 4294967168 }
   0xa   :  { %259 = dma.done.wait [#allocation6], 4480  }
   0xb   :  { %260 = vsyncadd [#allocation6], 4294962816  ;;  %v44_v0 = vld [vmem:[#allocation5 + $0x8] sm:$0xff]  ;;  %v43_v1 = vld [vmem:[#allocation5] sm:$0xff]  ;;  %vm47_vm0 = vcmask 130048   ;;  %v149_v43 = vlaneseq  ;;  %s267_s0 = smov [#allocation7]  }
   0xc   :  { %65 = vmatpush.msra.mxu0 %v44_v0  ;;  %v42_v2 = vld [vmem:[#allocation2] sm:$0xff]  ;;  %v87_v3 = vld [vmem:[#allocation5 + $0x88] sm:$0xff]  ;;  %v86_v4 = vld [vmem:[#allocation5 + $0x80] sm:$0xff]  ;;  %s163_s1 = sshll.u32 %s267_s0, 4  ;;  %s165_s23 = sshll.u32 %s294_s2, 4  ;;  %s164_s1 = int_to_ptr.vmem [resolvable:$true] %s163_s1  ;;  %s166_s23 = int_to_ptr.hbm [resolvable:$true] %s165_s23 }
   0xd   :  { %90 = vmatpush.msra.mxu1 %v87_v3  ;;  %v85_v5 = vld [vmem:[#allocation5 + $0x78] sm:$0xff]  ;;  %v84_v6 = vld [vmem:[#allocation5 + $0x70] sm:$0xff]  ;;  %v83_v7 = vld [vmem:[#allocation5 + $0x68] sm:$0xff]  ;;  %v150_v45 = vand.u32 127, %v149_v43 }
   0xe   :  { %66 = vmatpush.msra.mxu0 %v43_v1  ;;  %v82_v8 = vld [vmem:[#allocation5 + $0x60] sm:$0xff]  ;;  %v81_v9 = vld [vmem:[#allocation5 + $0x58] sm:$0xff]  ;;  %v80_v10 = vld [vmem:[#allocation5 + $0x50] sm:$0xff] }
   0xf   :  { %176 = vmatmul.msk.f32.vlgmr.msra.gmra.mxu0 %vm47_vm0, %v42_v2  ;;  %91 = vmatpush.msra.mxu1 %v86_v4  ;;  %v79_v11 = vld [vmem:[#allocation5 + $0x48] sm:$0xff]  ;;  %v78_v12 = vld [vmem:[#allocation5 + $0x40] sm:$0xff]  ;;  %v77_v13 = vld [vmem:[#allocation5 + $0x38] sm:$0xff]  ;;  %vm151_vm1 = vcmp.ge.s32.totalorder %v150_v45, 8  ;;  %vm152_vm2 = vcmp.lt.s32.totalorder %v150_v45, 16 }
  0x10   :  { %v76_v14 = vld [vmem:[#allocation5 + $0x30] sm:$0xff]  ;;  %v75_v15 = vld [vmem:[#allocation5 + $0x28] sm:$0xff]  ;;  %v74_v16 = vld [vmem:[#allocation5 + $0x20] sm:$0xff] }
  0x11   :  { %92 = vmatpush.msra.mxu1 %v85_v5  ;;  %v73_v17 = vld [vmem:[#allocation5 + $0x18] sm:$0xff]  ;;  %v72_v18 = vld [vmem:[#allocation5 + $0x10] sm:$0xff]  ;;  %v126_v19 = vld [vmem:[#allocation5 + $0x108] sm:$0xff] }
  0x12   :  { %v125_v20 = vld [vmem:[#allocation5 + $0x100] sm:$0xff]  ;;  %129 = vmatpush.msra.mxu2 %v126_v19  ;;  %v124_v21 = vld [vmem:[#allocation5 + $0xf8] sm:$0xff]  ;;  %v123_v22 = vld [vmem:[#allocation5 + $0xf0] sm:$0xff] }
  0x13   :  { %93 = vmatpush.msra.mxu1 %v84_v6  ;;  %v122_v23 = vld [vmem:[#allocation5 + $0xe8] sm:$0xff]  ;;  %v121_v24 = vld [vmem:[#allocation5 + $0xe0] sm:$0xff]  ;;  %v120_v25 = vld [vmem:[#allocation5 + $0xd8] sm:$0xff] }
  0x14   :  { %130 = vmatpush.msra.mxu2 %v125_v20  ;;  %v119_v26 = vld [vmem:[#allocation5 + $0xd0] sm:$0xff]  ;;  %v118_v27 = vld [vmem:[#allocation5 + $0xc8] sm:$0xff]  ;;  %v117_v28 = vld [vmem:[#allocation5 + $0xc0] sm:$0xff] }
  0x15   :  { %94 = vmatpush.msra.mxu1 %v83_v7  ;;  %v116_v29 = vld [vmem:[#allocation5 + $0xb8] sm:$0xff]  ;;  %v115_v30 = vld [vmem:[#allocation5 + $0xb0] sm:$0xff]  ;;  %v114_v31 = vld [vmem:[#allocation5 + $0xa8] sm:$0xff] }
  0x16   :  { %131 = vmatpush.msra.mxu2 %v124_v21  ;;  %v182_v32 = vld [vmem:[#allocation5 + $0x110] ss:$0 sm:$0xff]  ;;  %v113_v36 = vld [vmem:[#allocation5 + $0xa0] sm:$0xff]  ;;  %v112_v37 = vld [vmem:[#allocation5 + $0x98] sm:$0xff] }
  0x17   :  { %95 = vmatpush.msra.mxu1 %v82_v8  ;;  %v111_v38 = vld [vmem:[#allocation5 + $0x90] sm:$0xff]  ;;  %vm153_vm3 = vmand %vm151_vm1, %vm152_vm2 }
  0x18   :  { %132 = vmatpush.msra.mxu2 %v123_v22  ;;  %v183_v39 = vld [vmem:[#allocation5 + $0x111] ss:$0 sm:$0xff]  ;;  %v184_v44 = vld [vmem:[#allocation5 + $0x112] ss:$0 sm:$0xff] }
  0x19   :  { %96 = vmatpush.msra.mxu1 %v81_v9 }
  0x1a   :  { %133 = vmatpush.msra.mxu2 %v122_v23 }
  0x1b   :  { %97 = vmatpush.msra.mxu1 %v80_v10 }
  0x1c   :  { %134 = vmatpush.msra.mxu2 %v121_v24 }
  0x1d   :  { %98 = vmatpush.msra.mxu1 %v79_v11 }
  0x1e   :  { %135 = vmatpush.msra.mxu2 %v120_v25 }
  0x1f   :  { %99 = vmatpush.msra.mxu1 %v78_v12 }
  0x20   :  { %136 = vmatpush.msra.mxu2 %v119_v26 }
  0x21   :  { %100 = vmatpush.msra.mxu1 %v77_v13 }
  0x22   :  { %137 = vmatpush.msra.mxu2 %v118_v27 }
  0x23   :  { %101 = vmatpush.msra.mxu1 %v76_v14 }
  0x24   :  { %138 = vmatpush.msra.mxu2 %v117_v28 }
  0x25   :  { %102 = vmatpush.msra.mxu1 %v75_v15 }
  0x26   :  { %139 = vmatpush.msra.mxu2 %v116_v29 }
  0x27   :  { %103 = vmatpush.msra.mxu1 %v74_v16 }
  0x28   :  { %140 = vmatpush.msra.mxu2 %v115_v30 }
  0x29   :  { %104 = vmatpush.msra.mxu1 %v73_v17 }
  0x2a   :  { %141 = vmatpush.msra.mxu2 %v114_v31 }
  0x2b   :  { %105 = vmatpush.msra.mxu1 %v72_v18 }
  0x2c   :  { %142 = vmatpush.msra.mxu2 %v113_v36 }
  0x2e   :  { %143 = vmatpush.msra.mxu2 %v112_v37 }
  0x30   :  { %144 = vmatpush.msra.mxu2 %v111_v38 }
  0x8c   :  { %v68_v33 = vpop.f32.mrf.mxu0 }
  0x8d   :  { %v69_v34 = vadd.f32 %v182_v32, %v68_v33 }
  0x8f   :  { %v71_v35 = vmax.f32 %v69_v34, 0.0 }
  0x91   :  { %106 = vmatmul.f32.vlgmr.msra.gmra.mxu1 %v71_v35 }
 0x10e   :  { %v107_v40 = vpop.f32.mrf.mxu1 }
 0x10f   :  { %v108_v41 = vadd.f32 %v183_v39, %v107_v40 }
 0x111   :  { %v110_v42 = vmax.f32 %v108_v41, 0.0 }
 0x113   :  { %145 = vmatmul.f32.vlgmr.msra.gmra.mxu2 %v110_v42 }
 0x196   :  { %v146_v46 = vpop.f32.mrf.mxu2 }
 0x197   :  { %v147_v47 = vadd.f32 %v184_v44, %v146_v46 }
 0x199   :  { %v154_v48 = vmax.f32 %v147_v47, -20.0 }
 0x19b   :  { %v155_v49 = vmin.f32 %v154_v48, 2.0 }
 0x19d   :  { %v156_v50 = vsel %vm153_vm3, %v155_v49, %v147_v47 }
 0x19e   :  { %157 = vst [vmem:[#allocation7] sm:$0xff] %v156_v50 }
 0x19f   :  { %168 = dma.vmem_to_hbm [thread:$0]  %s164_s1, 128, %s166_s23, [#allocation4]  }
 0x1a0   :  { %261 = dma.done.wait [#allocation4], 128  }
 0x1a1   :  { %262 = vsyncadd [#allocation4], 4294967168 }
 0x1a2   :  { %173 = vsyncpa [#allocation3], 1 }
 0x1a3   :  { %174 = vsyncpa [#allocation6], 1 }
 0x1a4   :  { %175 = vsyncpa [#allocation4], 1 }

</bundles_post_ra>
